<compile_context>
chip_gen: v7x
topology: tpu7x:2x2x1
jax: 0.10.0
libtpu: 0.0.40
codegen_flags: <defaults>
</compile_context>

<pallas_src>
import jax
import jax.numpy as jnp
from jax import lax
from jax.experimental import pallas as pl
from jax.experimental.pallas import tpu as pltpu

C = 5  # number of special tokens dropped (except token 0), as in the module


def _global_cam_kernel(maps_ref, feat_ref, out_ref):
    # maps_ref: (B_tile, L, N, N)  contiguous per-batch layer stacks
    # feat_ref: (B_tile, N, dim)   features for the batch tile
    # out_ref : (B_tile, 1, 4*dim) lane-dense CAM rows
    B_tile, L, N, _ = maps_ref.shape
    dim = feat_ref.shape[2]
    NC = N - C
    f32 = jnp.float32
    map_dt = maps_ref.dtype
    feat_dt = feat_ref.dtype

    # ---- constants, hoisted out of the per-batch loop ------------------------
    # Token-selection mask over columns: keep {0} ∪ {C..N-1}, zero {1..C-1}.
    # Replaces the torch double-gather (idx_token) — selection done in VMEM.
    col = lax.broadcasted_iota(jnp.int32, (1, N), 1)
    sel = jnp.where((col == 0) | (col >= C), 1.0, 0.0).astype(f32)        # (1, N)

    # Part ranges (full-token coordinates), same floor division as the module:
    #   [C,N), [C,C+NC//2), [C+NC//4,C+3NC//4), [C+NC//2,N)
    row = lax.broadcasted_iota(jnp.int32, (N, 1), 0)
    parts = (
        (C, N),
        (C, C + NC // 2),
        (C + NC // 4, C + NC * 3 // 4),
        (C + NC // 2, N),
    )
    pmasks = [
        jnp.where((row >= lo) & (row < hi), 1.0, 0.0).astype(feat_dt)
        for lo, hi in parts
    ]                                                                      # 4 × (N, 1)

    # ---- per-batch work, statically unrolled (independent chains interleave) -
    for b in range(B_tile):
        # Only row 0 of  G[L-1] @ ... @ G[0]  is used, so carry a masked (1, N)
        # row vector in f32 and multiply through the layers in reverse order.
        t = sel * maps_ref[b, L - 1, 0:1, :].astype(f32)                   # (1, N)
        for l in range(L - 2, -1, -1):                                     # static unroll
            a = maps_ref[b, l]                                             # (N, N), native dtype
            t = sel * jnp.dot(t.astype(map_dt), a, preferred_element_type=f32)

        # CAM: one (1,N) @ (N,4*dim) dot over the part-masked ReLU features.
        relu_f = jnp.maximum(feat_ref[b], 0)                               # (N, dim)
        rhs = jnp.concatenate([pm * relu_f for pm in pmasks], axis=1)      # (N, 4*dim)
        cam = jnp.dot(t.astype(feat_dt), rhs, preferred_element_type=f32)  # (1, 4*dim)
        out_ref[b] = cam.astype(out_ref.dtype)


def _pick_b_tile(B, max_tile=8):
    """Largest batch tile ≤ max_tile that divides B (amortizes grid-step cost)."""
    for t in range(min(B, max_tile), 0, -1):
        if B % t == 0:
            return t
    return 1


def global_cam(x_stack, features, *, b_tile=None):
    """x_stack: (B, L, N, N) stacked attention maps (batch-major, contiguous per
    batch); features: (B, N, dim). Returns (B, 4, dim) float32."""
    B, L, N, N2 = x_stack.shape
    assert N == N2
    dim = features.shape[-1]
    if b_tile is None:
        b_tile = _pick_b_tile(B)
    assert B % b_tile == 0, (B, b_tile)

    # VMEM budget (depth-2 pipelining of every block); raise the scoped limit
    # only if the default would be exceeded, keep the big streaming blocks.
    msz = jnp.dtype(x_stack.dtype).itemsize
    fsz = jnp.dtype(features.dtype).itemsize
    block_bytes = 2 * (b_tile * L * N * N * msz
                       + b_tile * N * dim * fsz
                       + b_tile * 4 * dim * 4)
    vmem_limit = None
    if block_bytes > (14 << 20):
        vmem_limit = int(min(block_bytes + (8 << 20), 100 << 20))
    # TODO(synk): for very large L*N*N on v7x (64 MiB VMEM), split the L axis
    # into an "arbitrary" grid dim carrying the (1, N) row in a VMEM scratch.

    out = pl.pallas_call(
        _global_cam_kernel,
        out_shape=jax.ShapeDtypeStruct((B, 1, 4 * dim), jnp.float32),
        grid_spec=pltpu.PrefetchScalarGridSpec(
            num_scalar_prefetch=0,
            grid=(B // b_tile,),
            in_specs=[
                # One contiguous per-batch-tile slab per step, streamed once.
                pl.BlockSpec((b_tile, L, N, N), lambda g: (g, 0, 0, 0)),
                pl.BlockSpec((b_tile, N, dim), lambda g: (g, 0, 0)),
            ],
            # Lane-dense output rows (last dim = 4*dim).
            out_specs=pl.BlockSpec((b_tile, 1, 4 * dim), lambda g: (g, 0, 0)),
        ),
        compiler_params=pltpu.CompilerParams(
            dimension_semantics=("parallel",),
            vmem_limit_bytes=vmem_limit,
        ),
    )(x_stack, features)
    return out.reshape(B, 4, dim)


def global_cam_ref(x_stack, features):
    """Pure-JAX reference mirroring the PyTorch forward (x_stack batch-major)."""
    B, L, N, _ = x_stack.shape
    NC = N - C
    idx = jnp.concatenate(
        [jnp.zeros((1,), jnp.int32), jnp.arange(C, N, dtype=jnp.int32)]
    )
    maps = x_stack[:, :, idx, :][:, :, :, idx]          # (B, L, M, M)
    last = maps[:, 0]
    for i in range(1, L):
        last = jnp.matmul(maps[:, i], last)
    v = last[:, 0, 1:][:, None, :]                      # (B, 1, NC)
    partlist = [
        (C, N),
        (C, C + NC // 2),
        (C + NC // 4, C + NC * 3 // 4),
        (C + NC // 2, N),
    ]
    feats = []
    for p0, p1 in partlist:
        fm = jax.nn.relu(features[:, p0:p1])            # (B, p1-p0, dim)
        feats.append(jnp.matmul(v[:, :, p0 - C:p1 - C], fm))
    return jnp.concatenate(feats, axis=1)               # (B, 4, dim)


if __name__ == "__main__":
    key = jax.random.PRNGKey(0)
    B, L, N, dim = 2, 3, 21, 32  # N chosen so (N - C) = 16 splits evenly into parts

    k1, k2 = jax.random.split(key)
    # attention-like maps: row-softmax so the chained products stay well-scaled
    logits = jax.random.normal(k1, (B, L, N, N), dtype=jnp.float32)
    x_stack = jax.nn.softmax(logits, axis=-1)
    features = jax.random.normal(k2, (B, N, dim), dtype=jnp.float32)

    out = global_cam(x_stack, features)
    out = jax.block_until_ready(out)

    ref = global_cam_ref(x_stack, features)
    assert out.shape == (B, 4, dim), out.shape
    assert jnp.allclose(out, ref, rtol=1e-4, atol=1e-4), (
        "mismatch vs reference, max abs err = %g" % float(jnp.max(jnp.abs(out - ref)))
    )
    print("KERNEL_OK")
</pallas_src>

<mosaic_0001>
module attributes {stable_mosaic.version = 11 : i64} {
  func.func @_global_cam_kernel(%arg0: i32, %arg1: memref<2x3x21x21xf32, #tpu.memory_space<vmem>>, %arg2: memref<2x21x32xf32, #tpu.memory_space<vmem>>, %arg3: memref<2x1x128xf32, #tpu.memory_space<vmem>>) attributes {dimension_semantics = [#tpu.dimension_semantics<parallel>], iteration_bounds = array<i64: 1>, scalar_prefetch = 0 : i64, scratch_operands = 0 : i64, tpu.core_type = #tpu.core_type<tc>, window_params = [{transform_indices = @transform_0, window_bounds = array<i64: 2, 3, 21, 21>}, {transform_indices = @transform_1, window_bounds = array<i64: 2, 21, 32>}, {transform_indices = @transform_2, window_bounds = array<i64: 2, 1, 128>}]} {
    %0 = tpu.iota {dimensions = array<i32: 1>} : vector<1x21xi32>
    %c0_i32 = arith.constant 0 : i32
    %1 = vector.broadcast %c0_i32 : i32 to vector<1x21xi32>
    %2 = arith.cmpi eq, %0, %1 : vector<1x21xi32>
    %c5_i32 = arith.constant 5 : i32
    %3 = vector.broadcast %c5_i32 : i32 to vector<1x21xi32>
    %4 = arith.cmpi sge, %0, %3 : vector<1x21xi32>
    %5 = arith.ori %2, %4 : vector<1x21xi1>
    %cst = arith.constant 1.000000e+00 : f32
    %cst_0 = arith.constant 0.000000e+00 : f32
    %6 = vector.broadcast %cst : f32 to vector<1x21xf32>
    %7 = vector.broadcast %cst_0 : f32 to vector<1x21xf32>
    %8 = arith.select %5, %6, %7 : vector<1x21xi1>, vector<1x21xf32>
    %9 = tpu.iota {dimensions = array<i32: 0>} : vector<21x1xi32>
    %c5_i32_1 = arith.constant 5 : i32
    %10 = vector.broadcast %c5_i32_1 : i32 to vector<21x1xi32>
    %11 = arith.cmpi sge, %9, %10 : vector<21x1xi32>
    %c21_i32 = arith.constant 21 : i32
    %12 = vector.broadcast %c21_i32 : i32 to vector<21x1xi32>
    %13 = arith.cmpi slt, %9, %12 : vector<21x1xi32>
    %14 = arith.andi %11, %13 : vector<21x1xi1>
    %cst_2 = arith.constant 1.000000e+00 : f32
    %cst_3 = arith.constant 0.000000e+00 : f32
    %15 = vector.broadcast %cst_2 : f32 to vector<21x1xf32>
    %16 = vector.broadcast %cst_3 : f32 to vector<21x1xf32>
    %17 = arith.select %14, %15, %16 : vector<21x1xi1>, vector<21x1xf32>
    %c5_i32_4 = arith.constant 5 : i32
    %18 = vector.broadcast %c5_i32_4 : i32 to vector<21x1xi32>
    %19 = arith.cmpi sge, %9, %18 : vector<21x1xi32>
    %c13_i32 = arith.constant 13 : i32
    %20 = vector.broadcast %c13_i32 : i32 to vector<21x1xi32>
    %21 = arith.cmpi slt, %9, %20 : vector<21x1xi32>
    %22 = arith.andi %19, %21 : vector<21x1xi1>
    %cst_5 = arith.constant 1.000000e+00 : f32
    %cst_6 = arith.constant 0.000000e+00 : f32
    %23 = vector.broadcast %cst_5 : f32 to vector<21x1xf32>
    %24 = vector.broadcast %cst_6 : f32 to vector<21x1xf32>
    %25 = arith.select %22, %23, %24 : vector<21x1xi1>, vector<21x1xf32>
    %c9_i32 = arith.constant 9 : i32
    %26 = vector.broadcast %c9_i32 : i32 to vector<21x1xi32>
    %27 = arith.cmpi sge, %9, %26 : vector<21x1xi32>
    %c17_i32 = arith.constant 17 : i32
    %28 = vector.broadcast %c17_i32 : i32 to vector<21x1xi32>
    %29 = arith.cmpi slt, %9, %28 : vector<21x1xi32>
    %30 = arith.andi %27, %29 : vector<21x1xi1>
    %cst_7 = arith.constant 1.000000e+00 : f32
    %cst_8 = arith.constant 0.000000e+00 : f32
    %31 = vector.broadcast %cst_7 : f32 to vector<21x1xf32>
    %32 = vector.broadcast %cst_8 : f32 to vector<21x1xf32>
    %33 = arith.select %30, %31, %32 : vector<21x1xi1>, vector<21x1xf32>
    %c13_i32_9 = arith.constant 13 : i32
    %34 = vector.broadcast %c13_i32_9 : i32 to vector<21x1xi32>
    %35 = arith.cmpi sge, %9, %34 : vector<21x1xi32>
    %c21_i32_10 = arith.constant 21 : i32
    %36 = vector.broadcast %c21_i32_10 : i32 to vector<21x1xi32>
    %37 = arith.cmpi slt, %9, %36 : vector<21x1xi32>
    %38 = arith.andi %35, %37 : vector<21x1xi1>
    %cst_11 = arith.constant 1.000000e+00 : f32
    %cst_12 = arith.constant 0.000000e+00 : f32
    %39 = vector.broadcast %cst_11 : f32 to vector<21x1xf32>
    %40 = vector.broadcast %cst_12 : f32 to vector<21x1xf32>
    %41 = arith.select %38, %39, %40 : vector<21x1xi1>, vector<21x1xf32>
    %c0 = arith.constant 0 : index
    %c2 = arith.constant 2 : index
    %c0_13 = arith.constant 0 : index
    %c0_14 = arith.constant 0 : index
    %42 = vector.load %arg1[%c0, %c2, %c0_13, %c0_14] : memref<2x3x21x21xf32, #tpu.memory_space<vmem>>, vector<1x1x1x21xf32>
    %43 = vector.shape_cast %42 : vector<1x1x1x21xf32> to vector<1x21xf32>
    %44 = arith.mulf %8, %43 : vector<1x21xf32>
    %c0_15 = arith.constant 0 : index
    %c1 = arith.constant 1 : index
    %c0_16 = arith.constant 0 : index
    %c0_17 = arith.constant 0 : index
    %45 = vector.load %arg1[%c0_15, %c1, %c0_16, %c0_17] : memref<2x3x21x21xf32, #tpu.memory_space<vmem>>, vector<1x1x21x21xf32>
    %46 = vector.shape_cast %45 : vector<1x1x21x21xf32> to vector<21x21xf32>
    %cst_18 = arith.constant dense<0.000000e+00> : vector<1x21xf32>
    %47 = tpu.matmul %44, %46, %cst_18 {dimension_numbers = #tpu.dot_dimension_numbers<[1], [0], [0], [1], [0, 0, 1, 1], [], []>} : vector<1x21xf32>, vector<21x21xf32>, vector<1x21xf32> -> vector<1x21xf32>
    %48 = arith.mulf %8, %47 : vector<1x21xf32>
    %c0_19 = arith.constant 0 : index
    %c0_20 = arith.constant 0 : index
    %c0_21 = arith.constant 0 : index
    %c0_22 = arith.constant 0 : index
    %49 = vector.load %arg1[%c0_19, %c0_20, %c0_21, %c0_22] : memref<2x3x21x21xf32, #tpu.memory_space<vmem>>, vector<1x1x21x21xf32>
    %50 = vector.shape_cast %49 : vector<1x1x21x21xf32> to vector<21x21xf32>
    %cst_23 = arith.constant dense<0.000000e+00> : vector<1x21xf32>
    %51 = tpu.matmul %48, %50, %cst_23 {dimension_numbers = #tpu.dot_dimension_numbers<[1], [0], [0], [1], [0, 0, 1, 1], [], []>} : vector<1x21xf32>, vector<21x21xf32>, vector<1x21xf32> -> vector<1x21xf32>
    %52 = arith.mulf %8, %51 : vector<1x21xf32>
    %c0_24 = arith.constant 0 : index
    %c0_25 = arith.constant 0 : index
    %c0_26 = arith.constant 0 : index
    %53 = vector.load %arg2[%c0_24, %c0_25, %c0_26] : memref<2x21x32xf32, #tpu.memory_space<vmem>>, vector<1x21x32xf32>
    %54 = vector.shape_cast %53 : vector<1x21x32xf32> to vector<21x32xf32>
    %cst_27 = arith.constant 0.000000e+00 : f32
    %55 = vector.broadcast %cst_27 : f32 to vector<21x32xf32>
    %56 = arith.maximumf %54, %55 : vector<21x32xf32>
    %57 = vector.broadcast %17 : vector<21x1xf32> to vector<21x32xf32>
    %58 = arith.mulf %57, %56 : vector<21x32xf32>
    %59 = vector.broadcast %25 : vector<21x1xf32> to vector<21x32xf32>
    %60 = arith.mulf %59, %56 : vector<21x32xf32>
    %61 = vector.broadcast %33 : vector<21x1xf32> to vector<21x32xf32>
    %62 = arith.mulf %61, %56 : vector<21x32xf32>
    %63 = vector.broadcast %41 : vector<21x1xf32> to vector<21x32xf32>
    %64 = arith.mulf %63, %56 : vector<21x32xf32>
    %65 = tpu.concatenate %58, %60, %62, %64 in 1 : vector<21x32xf32>, vector<21x32xf32>, vector<21x32xf32>, vector<21x32xf32> -> vector<21x128xf32>
    %cst_28 = arith.constant dense<0.000000e+00> : vector<1x128xf32>
    %66 = tpu.matmul %52, %65, %cst_28 {dimension_numbers = #tpu.dot_dimension_numbers<[1], [0], [0], [1], [0, 0, 1, 1], [], []>} : vector<1x21xf32>, vector<21x128xf32>, vector<1x128xf32> -> vector<1x128xf32>
    %c0_29 = arith.constant 0 : index
    %c0_30 = arith.constant 0 : index
    %c0_31 = arith.constant 0 : index
    %67 = vector.load %arg3[%c0_29, %c0_30, %c0_31] : memref<2x1x128xf32, #tpu.memory_space<vmem>>, vector<1x1x128xf32>
    %68 = vector.shape_cast %67 : vector<1x1x128xf32> to vector<1x128xf32>
    %69 = vector.shape_cast %66 : vector<1x128xf32> to vector<1x1x128xf32>
    tpu.vector_store %arg3[%c0_29, %c0_30, %c0_31], %69 {strides = array<i32>} : memref<2x1x128xf32, #tpu.memory_space<vmem>>, vector<1x1x128xf32>,
    %c1_32 = arith.constant 1 : index
    %c2_33 = arith.constant 2 : index
    %c0_34 = arith.constant 0 : index
    %c0_35 = arith.constant 0 : index
    %70 = vector.load %arg1[%c1_32, %c2_33, %c0_34, %c0_35] : memref<2x3x21x21xf32, #tpu.memory_space<vmem>>, vector<1x1x1x21xf32>
    %71 = vector.shape_cast %70 : vector<1x1x1x21xf32> to vector<1x21xf32>
    %72 = arith.mulf %8, %71 : vector<1x21xf32>
    %c1_36 = arith.constant 1 : index
    %c1_37 = arith.constant 1 : index
    %c0_38 = arith.constant 0 : index
    %c0_39 = arith.constant 0 : index
    %73 = vector.load %arg1[%c1_36, %c1_37, %c0_38, %c0_39] : memref<2x3x21x21xf32, #tpu.memory_space<vmem>>, vector<1x1x21x21xf32>
    %74 = vector.shape_cast %73 : vector<1x1x21x21xf32> to vector<21x21xf32>
    %cst_40 = arith.constant dense<0.000000e+00> : vector<1x21xf32>
    %75 = tpu.matmul %72, %74, %cst_40 {dimension_numbers = #tpu.dot_dimension_numbers<[1], [0], [0], [1], [0, 0, 1, 1], [], []>} : vector<1x21xf32>, vector<21x21xf32>, vector<1x21xf32> -> vector<1x21xf32>
    %76 = arith.mulf %8, %75 : vector<1x21xf32>
    %c1_41 = arith.constant 1 : index
    %c0_42 = arith.constant 0 : index
    %c0_43 = arith.constant 0 : index
    %c0_44 = arith.constant 0 : index
    %77 = vector.load %arg1[%c1_41, %c0_42, %c0_43, %c0_44] : memref<2x3x21x21xf32, #tpu.memory_space<vmem>>, vector<1x1x21x21xf32>
    %78 = vector.shape_cast %77 : vector<1x1x21x21xf32> to vector<21x21xf32>
    %cst_45 = arith.constant dense<0.000000e+00> : vector<1x21xf32>
    %79 = tpu.matmul %76, %78, %cst_45 {dimension_numbers = #tpu.dot_dimension_numbers<[1], [0], [0], [1], [0, 0, 1, 1], [], []>} : vector<1x21xf32>, vector<21x21xf32>, vector<1x21xf32> -> vector<1x21xf32>
    %80 = arith.mulf %8, %79 : vector<1x21xf32>
    %c1_46 = arith.constant 1 : index
    %c0_47 = arith.constant 0 : index
    %c0_48 = arith.constant 0 : index
    %81 = vector.load %arg2[%c1_46, %c0_47, %c0_48] : memref<2x21x32xf32, #tpu.memory_space<vmem>>, vector<1x21x32xf32>
    %82 = vector.shape_cast %81 : vector<1x21x32xf32> to vector<21x32xf32>
    %cst_49 = arith.constant 0.000000e+00 : f32
    %83 = vector.broadcast %cst_49 : f32 to vector<21x32xf32>
    %84 = arith.maximumf %82, %83 : vector<21x32xf32>
    %85 = vector.broadcast %17 : vector<21x1xf32> to vector<21x32xf32>
    %86 = arith.mulf %85, %84 : vector<21x32xf32>
    %87 = vector.broadcast %25 : vector<21x1xf32> to vector<21x32xf32>
    %88 = arith.mulf %87, %84 : vector<21x32xf32>
    %89 = vector.broadcast %33 : vector<21x1xf32> to vector<21x32xf32>
    %90 = arith.mulf %89, %84 : vector<21x32xf32>
    %91 = vector.broadcast %41 : vector<21x1xf32> to vector<21x32xf32>
    %92 = arith.mulf %91, %84 : vector<21x32xf32>
    %93 = tpu.concatenate %86, %88, %90, %92 in 1 : vector<21x32xf32>, vector<21x32xf32>, vector<21x32xf32>, vector<21x32xf32> -> vector<21x128xf32>
    %cst_50 = arith.constant dense<0.000000e+00> : vector<1x128xf32>
    %94 = tpu.matmul %80, %93, %cst_50 {dimension_numbers = #tpu.dot_dimension_numbers<[1], [0], [0], [1], [0, 0, 1, 1], [], []>} : vector<1x21xf32>, vector<21x128xf32>, vector<1x128xf32> -> vector<1x128xf32>
    %c1_51 = arith.constant 1 : index
    %c0_52 = arith.constant 0 : index
    %c0_53 = arith.constant 0 : index
    %95 = vector.load %arg3[%c1_51, %c0_52, %c0_53] : memref<2x1x128xf32, #tpu.memory_space<vmem>>, vector<1x1x128xf32>
    %96 = vector.shape_cast %95 : vector<1x1x128xf32> to vector<1x128xf32>
    %97 = vector.shape_cast %94 : vector<1x128xf32> to vector<1x1x128xf32>
    tpu.vector_store %arg3[%c1_51, %c0_52, %c0_53], %97 {strides = array<i32>} : memref<2x1x128xf32, #tpu.memory_space<vmem>>, vector<1x1x128xf32>,
    return
  }
  func.func @transform_0(%arg0: i32) -> (i32, i32, i32, i32) {
    %c0_i32 = arith.constant 0 : i32
    %c0_i32_0 = arith.constant 0 : i32
    %c0_i32_1 = arith.constant 0 : i32
    %c0_i32_2 = arith.constant 0 : i32
    return %arg0, %c0_i32, %c0_i32_0, %c0_i32_1 : i32, i32, i32, i32
  }
  func.func @transform_1(%arg0: i32) -> (i32, i32, i32) {
    %c0_i32 = arith.constant 0 : i32
    %c0_i32_0 = arith.constant 0 : i32
    %c0_i32_1 = arith.constant 0 : i32
    return %arg0, %c0_i32, %c0_i32_0 : i32, i32, i32
  }
  func.func @transform_2(%arg0: i32) -> (i32, i32, i32) {
    %c0_i32 = arith.constant 0 : i32
    %c0_i32_0 = arith.constant 0 : i32
    %c0_i32_1 = arith.constant 0 : i32
    return %arg0, %c0_i32, %c0_i32_0 : i32, i32, i32
  }
}

</mosaic_0001>

<bundles_post_ra>
// kernel: tpu_custom_call.1
= control target key start
LH: loop header
LB: loop body
LE: loop exit
PB: predicated region body
PF: predicated region fallthrough
CT: control target
= control target key end

     0   :  { %v12_v2 = vlaneseq  ;;  %v881_v3 = vmov 0.0|0.0   ;;  %vm882_vm0 = vmmov 0   ;;  %v883_v6 = vmov 0.0   ;;  %s1082_s0 = inlined_call_operand.vmem [shape: f32[2,3,21,21], index: 0, kind: input, shape index: {}]   ;;  %s1083_s1 = inlined_call_operand.vmem [shape: f32[2,21,32], index: 1, kind: input, shape index: {}]   ;;  %s1084_s2 = inlined_call_operand.hbm [shape: f32[2,1,128], index: 2, kind: output, shape index: {}]  }
   0x1   :  { %v697_v0 = vld [vmem:[%s1082_s0 + $0x18] sm:$0xff]  ;;  %v698_v1 = vld [vmem:[%s1082_s0 + $0x20] sm:$0xff]  ;;  %800 = vmatprep.subr.bf16.mxu0 %v881_v3  ;;  %803 = vmatprep.subr.bf16.mxu1 %v881_v3  ;;  %v151_v8 = vld [vmem:[%s1082_s0 + $0x8] sm:$0xff] }
   0x2   :  { %v801_v4 = vpack.c.bf16 %v698_v1, %v697_v0  ;;  %v150_v5 = vld [vmem:[%s1082_s0] sm:$0xff]  ;;  %752 = vmatprep.mubr.msk.f32.mxu0 %vm882_vm0, %v883_v6  ;;  %v13_v7 = vand.u32 127, %v12_v2  ;;  %761 = vmatprep.mubr.msk.f32.mxu1 %vm882_vm0, %v883_v6 }
   0x3   :  { %7 = vsyncpa [#allocation3], 0  ;;  %v699_v9 = vld [vmem:[%s1082_s0 + $0x28] sm:$0x1f]  ;;  %v804_v10 = vpack.c.bf16 %v151_v8, %v150_v5  ;;  %vm75_vm1 = vcmask 1044480   ;;  %vm71_vm5 = vcmask 171008  }
   0x4   :  { %802 = vmatpush3.bf16.msra.mxu0 %v801_v4  ;;  %vm14_vm2 = vcmp.eq.s32.totalorder %v13_v7, 0  ;;  %vm15_vm3 = vcmp.ge.s32.totalorder %v13_v7, 5  ;;  %v696_v11 = vld [vmem:[%s1082_s0 + $0x30] sm:$0x1]  ;;  %v19_v15 = vshrl.u32 %v12_v2, 7  ;;  %v230_v16 = vld [vmem:[%s1083_s1] sm:$0xff] }
   0x5   :  { %750 = vmatprep.subr.mxu0 %v883_v6  ;;  %vm16_vm4 = vmor %vm14_vm2, %vm15_vm3  ;;  %805 = vmatpush3.bf16.msra.mxu1 %v804_v10  ;;  %v152_v14 = vld [vmem:[%s1082_s0 + $0x10] sm:$0x1f]  ;;  %v231_v17 = vld [vmem:[%s1083_s1 + $0x8] sm:$0xff]  ;;  %v233_v18 = vmax.f32 %v230_v16, 0.0  ;;  %s884_s29 = smov 32   ;;  %s885_s30 = smov 96  }
   0x6   :  { %v931_v12 = vsel %vm16_vm4, 1.0, %v883_v6  ;;  %759 = vmatprep.subr.mxu1 %v883_v6  ;;  %v20_v19 = vadd.s32 8, %v19_v15  ;;  %vm22_vm6 = vcmp.ge.s32.totalorder %v19_v15, 5  ;;  %v234_v20 = vmax.f32 %v231_v17, 0.0  ;;  %v232_v23 = vld [vmem:[%s1083_s1 + $0x10] sm:$0x1f] }
   0x7   :  { %v66_v13 = vmul.f32 %v696_v11, %v931_v12  ;;  %v952_v21 = vsel %vm22_vm6, 1.0, %v883_v6  ;;  %v21_v24 = vadd.s32 16, %v19_v15  ;;  %v242_v27 = vmul.f32 0.0, %v233_v18  ;;  %s886_s3 = smov 64   ;;  %v707_v41 = vld [vmem:[%s1082_s0 + $0x60] sm:$0xff]  ;;  %v708_v42 = vld [vmem:[%s1082_s0 + $0x68] sm:$0xff] }
   0x8   :  { %751 = vmatpush3.msk.msra.mxu0 %vm75_vm1, %v699_v9  ;;  %vm35_vm7 = vcmp.lt.s32.totalorder %v20_v19, 13  ;;  %v236_v22 = vmul.f32 %v233_v18, %v952_v21  ;;  %vm44_vm8 = vcmp.ge.s32.totalorder %v20_v19, 9  ;;  %vm56_vm9 = vcmp.ge.s32.totalorder %v20_v19, 13  ;;  %v706_v47 = vld [vmem:[%s1082_s0 + $0x78] sm:$0x1]  ;;  %v718_v11 = vld [vmem:[%s1083_s1 + $0x20] sm:$0xff] }
   0x9   :  { %806 = vmatprep.subr.bf16.mxu0 %v881_v3  ;;  %753 = vmatmul.mubr.msk.f32.vlgmr.msra.gmra.mrb[0].mxu0 %vm71_vm5, %v66_v13  ;;  %v959_v25 = vsel %vm35_vm7, 1.0, %v883_v6  ;;  %v962_v26 = vsel %vm44_vm8, 1.0, %v883_v6  ;;  %v967_v30 = vsel %vm56_vm9, 1.0, %v883_v6  ;;  %v235_v32 = vmax.f32 %v232_v23, 0.0  ;;  %v709_v48 = vld [vmem:[%s1082_s0 + $0x70] sm:$0x1f] }
   0xa   :  { %770 = vmatprep.mubr.msk.f32.mxu0 %vm882_vm0, %v883_v6  ;;  %760 = vmatpush3.msk.msra.mxu1 %vm75_vm1, %v152_v14  ;;  %v240_v28 = vmul.f32 %v234_v20, %v959_v25  ;;  %v243_v29 = vmul.f32 %v234_v20, %v962_v26  ;;  %v246_v31 = vmul.f32 %v234_v20, %v967_v30  ;;  %vm48_vm10 = vcmp.lt.s32.totalorder %v21_v24, 17  ;;  %v717_v10 = vld [vmem:[%s1083_s1 + $0x18] sm:$0xff] }
   0xb   :  { %809 = vmatprep.subr.bf16.mxu1 %v881_v3  ;;  %vm27_vm11 = vcmp.lt.s32.totalorder %v21_v24, 21  ;;  %v241_v36 = vmul.f32 0.0, %v235_v32  ;;  %v973_v37 = vsel %vm48_vm10, 1.0, %v883_v6  ;;  %v810_v44 = vpack.c.bf16 %v708_v42, %v707_v41 }
   0xc   :  { %v827_v33 = vpack.i.bf16 %v240_v28, %v236_v22  ;;  %v837_v34 = vpack.i.bf16 %v246_v31, %v242_v27  ;;  %v832_v35 = vpack.i.bf16 %v243_v29, %v242_v27  ;;  %v976_v38 = vsel %vm27_vm11, 1.0, %v883_v6  ;;  %v712_v27 = vld [vmem:[%s1082_s0 + $0x48] sm:$0xff]  ;;  %v713_v28 = vld [vmem:[%s1082_s0 + $0x50] sm:$0xff] }
   0xd   :  { %v244_v39 = vmul.f32 %v235_v32, %v973_v37  ;;  %v238_v40 = vmul.f32 %v235_v32, %v976_v38  ;;  %v375_v49 = vmul.f32 %v706_v47, %v931_v12  ;;  %vm284_vm12 = vcmask 261120  }
   0xe   :  { %828 = vrot.lane.b32.xlu0 %v827_v33, %s884_s29  ;;  %838 = vrot.lane.b32.xlu1 %v837_v34, %s885_s30  ;;  %vm288_vm13 = vcmask 523264   ;;  %vm292_vm14 = vcmask 785408   ;;  %v542_v13 = vmax.f32 %v717_v10, 0.0  ;;  %v543_v14 = vmax.f32 %v718_v11, 0.0 }
   0xf   :  { %v813_v32 = vpack.c.bf16 %v713_v28, %v712_v27 }
  0x10   :  { %v545_v15 = vmul.f32 %v542_v13, %v952_v21  ;;  %v549_v16 = vmul.f32 %v543_v14, %v959_v25  ;;  %v555_v17 = vmul.f32 %v543_v14, %v967_v30  ;;  %v551_v19 = vmul.f32 0.0, %v542_v13 }
  0x12   :  { %833 = vrot.lane.b32.xlu0 %v832_v35, %s886_s3  ;;  %255 = vrot.lane.b32.xlu1 %v241_v36, %s884_s29  ;;  %v842_v18 = vpack.i.bf16 %v549_v16, %v545_v15  ;;  %v852_v24 = vpack.i.bf16 %v555_v17, %v551_v19 }
  0x16   :  { %267 = vrot.lane.b32.xlu0 %v244_v39, %s886_s3  ;;  %279 = vrot.lane.b32.xlu1 %v238_v40, %s885_s30 }
  0x1a   :  { %843 = vrot.lane.b32.xlu0 %v842_v18, %s884_s29 }
  0x1e   :  { %853 = vrot.lane.b32.xlu0 %v852_v24, %s885_s30 }
  0x80   :  { %v829_v50 = vpop.permute.xlu0 %828  ;;  %v839_v53 = vpop.permute.xlu1 %838 }
  0x81   :  { %v831_v51 = vunpack.i.h.bf16 %v829_v50  ;;  %v830_v52 = vunpack.i.l.bf16 %v829_v50  ;;  %v841_v57 = vunpack.i.h.bf16 %v839_v53  ;;  %v840_v58 = vunpack.i.l.bf16 %v839_v53 }
  0x83   :  { %v286_v54 = vsel %vm284_vm12, %v234_v20, %v831_v51  ;;  %v285_v55 = vsel %vm284_vm12, %v236_v22, %v830_v52  ;;  %v719_v20 = vld [vmem:[%s1083_s1 + $0x28] sm:$0x1f] }
  0x84   :  { %v834_v56 = vpop.permute.xlu0 %833  ;;  %v256_v61 = vpop.permute.xlu1 %255  ;;  %v544_v22 = vmax.f32 %v719_v20, 0.0 }
  0x85   :  { %v836_v59 = vunpack.i.h.bf16 %v834_v56  ;;  %v835_v60 = vunpack.i.l.bf16 %v834_v56  ;;  %v287_v62 = vsel %vm284_vm12, %v238_v40, %v256_v61 }
  0x86   :  { %v550_v21 = vmul.f32 0.0, %v544_v22  ;;  %v553_v25 = vmul.f32 %v544_v22, %v973_v37 }
  0x87   :  { %v289_v63 = vsel %vm288_vm13, %v285_v55, %v835_v60  ;;  %v290_v0 = vsel %vm288_vm13, %v286_v54, %v836_v59 }
  0x88   :  { %v293_v1 = vsel %vm292_vm14, %v289_v63, %v840_v58  ;;  %v294_v2 = vsel %vm292_vm14, %v290_v0, %v841_v57  ;;  %v268_v4 = vpop.permute.xlu0 %267  ;;  %v280_v8 = vpop.permute.xlu1 %279  ;;  %576 = vrot.lane.b32.xlu0 %v553_v25, %s886_s3 }
  0x89   :  { %v807_v5 = vpack.c.bf16 %v294_v2, %v293_v1  ;;  %v291_v7 = vsel %vm288_vm13, %v287_v62, %v268_v4 }
  0x8a   :  { %v295_v9 = vsel %vm292_vm14, %v291_v7, %v280_v8 }
  0x8b   :  { %808 = vmatpush3.bf16.msra.mxu0 %v807_v5 }
  0x8c   :  { %768 = vmatprep.subr.mxu0 %v883_v6  ;;  %v844_v29 = vpop.permute.xlu0 %843 }
  0x8d   :  { %v846_v30 = vunpack.i.h.bf16 %v844_v29  ;;  %v845_v31 = vunpack.i.l.bf16 %v844_v29 }
  0x8f   :  { %769 = vmatpush3.msk.msra.mxu0 %vm75_vm1, %v295_v9  ;;  %v594_v35 = vsel %vm284_vm12, %v543_v14, %v846_v30  ;;  %v593_v36 = vsel %vm284_vm12, %v545_v15, %v845_v31 }
  0x90   :  { %812 = vmatprep.subr.bf16.mxu0 %v881_v3  ;;  %v854_v41 = vpop.permute.xlu0 %853 }
  0xdc   :  { %v145_v43 = vpop.f32.mrb[0].mxu0 }
  0xdd   :  { %v149_v45 = vmul.f32 %v145_v43, %v931_v12  ;;  %v754_v46 = vpop.f32.mrb[1].mxu0 }
  0xdf   :  { %762 = vmatmul.mubr.msk.f32.vlgmr.msra.gmra.mrb[0].mxu1 %vm71_vm5, %v149_v45  ;;  %v855_v45 = vunpack.i.l.bf16 %v854_v41 }
  0xe0   :  { %811 = vmatpush3.bf16.msra.mxu1 %v810_v44  ;;  %779 = vmatprep.mubr.msk.f32.mxu1 %vm882_vm0, %v883_v6  ;;  %v856_v44 = vunpack.i.h.bf16 %v854_v41 }
  0xe1   :  { %777 = vmatprep.subr.mxu1 %v883_v6 }
  0xe4   :  { %778 = vmatpush3.msk.msra.mxu1 %vm75_vm1, %v709_v48  ;;  %v714_v48 = vld [vmem:[%s1082_s0 + $0x58] sm:$0x1f]  ;;  %s887_s0 = smov [#allocation2]  }
  0xe5   :  { %780 = vmatmul.mubr.msk.f32.vlgmr.msra.gmra.mrb[2].mxu1 %vm71_vm5, %v375_v49  ;;  %815 = vmatprep.subr.bf16.mxu1 %v881_v3  ;;  %v552_v3 = vmul.f32 %v543_v14, %v962_v26  ;;  %v547_v26 = vmul.f32 %v544_v22, %v976_v38  ;;  %s685_s23 = sshll.u32 %s887_s0, 4  ;;  %s686_s23 = int_to_ptr.vmem [resolvable:$true] %s685_s23 }
  0xe6   :  { %797 = vmatprep.mubr.msk.f32.mxu1 %vm882_vm0, %v883_v6  ;;  %s857_s24 = scalar_lea.vmem %s686_s23, 32  ;;  %p862_p1 = scmp.lt.s32.totalorder %s686_s23, %s686_s23 }
  0xe7   :  { %v847_v23 = vpack.i.bf16 %v552_v3, %v551_v19  ;;  %p858_p0 = scmp.ne.s32.totalorder %s686_s23, %s857_s24  ;;  %p863_p2 = scmp.lt.s32.totalorder %s857_s24, %s857_s24 }
  0xe9   :  { %848 = vrot.lane.b32.xlu1 %v847_v23, %s886_s3  ;;  %p864_p3 = por %p863_p2, %p862_p1 }
  0xeb   :  { %p865_p4 = pnand %p864_p3, %p858_p0 }
  0xed   :  { %564 = vrot.lane.b32.xlu1 %v550_v21, %s884_s29 }
  0xf1   :  { %588 = vrot.lane.b32.xlu1 %v547_v26, %s885_s30 }
  0xfa   :  { %v577_v55 = vpop.permute.xlu0 %576 }
 0x15b   :  { %v849_v33 = vpop.permute.xlu1 %848 }
 0x15c   :  { %v851_v37 = vunpack.i.h.bf16 %v849_v33  ;;  %v850_v38 = vunpack.i.l.bf16 %v849_v33 }
 0x15e   :  { %v596_v42 = vsel %vm288_vm13, %v593_v36, %v850_v38  ;;  %v597_v43 = vsel %vm288_vm13, %v594_v35, %v851_v37 }
 0x15f   :  { %v599_v46 = vsel %vm292_vm14, %v596_v42, %v855_v45  ;;  %v600_v47 = vsel %vm292_vm14, %v597_v43, %v856_v44  ;;  %v565_v53 = vpop.permute.xlu1 %564 }
 0x160   :  { %v816_v49 = vpack.c.bf16 %v600_v47, %v599_v46  ;;  %v595_v54 = vsel %vm284_vm12, %v547_v26, %v565_v53 }
 0x161   :  { %v598_v57 = vsel %vm288_vm13, %v595_v54, %v577_v55 }
 0x162   :  { %817 = vmatpush3.bf16.msra.mxu1 %v816_v49 }
 0x163   :  { %795 = vmatprep.subr.mxu1 %v883_v6  ;;  %v589_v56 = vpop.permute.xlu1 %588 }
 0x164   :  { %v601_v58 = vsel %vm292_vm14, %v598_v57, %v589_v56 }
 0x166   :  { %796 = vmatpush3.msk.msra.mxu1 %vm75_vm1, %v601_v58 }
 0x1b2   :  { %v225_v34 = vpop.f32.mrb[0].mxu1 }
 0x1b3   :  { %v229_v39 = vmul.f32 %v225_v34, %v931_v12  ;;  %v763_v40 = vpop.f32.mrb[1].mxu1 }
 0x1b5   :  { %771 = vmatmul.mubr.msk.f32.vlgmr.msra.gmra.mrb[2].mxu0 %vm71_vm5, %v229_v39 }
 0x1b6   :  { %814 = vmatpush3.bf16.msra.mxu0 %v813_v32  ;;  %788 = vmatprep.mubr.msk.f32.mxu0 %vm882_vm0, %v883_v6 }
 0x1b7   :  { %786 = vmatprep.subr.mxu0 %v883_v6 }
 0x1b8   :  { %v452_v50 = vpop.f32.mrb[2].mxu1 }
 0x1b9   :  { %v456_v51 = vmul.f32 %v452_v50, %v931_v12  ;;  %v781_v52 = vpop.f32.mrb[3].mxu1 }
 0x1ba   :  { %787 = vmatpush3.msk.msra.mxu0 %vm75_vm1, %v714_v48 }
 0x1bb   :  { %789 = vmatmul.mubr.msk.f32.vlgmr.msra.gmra.mrb[4].mxu0 %vm71_vm5, %v456_v51 }
 0x288   :  { %v368_v59 = vpop.f32.mrb[2].mxu0 }
 0x289   :  { %372 = vst [vmem:[#allocation2] sm:$0x1] %v368_v59  ;;  %v772_v60 = vpop.f32.mrb[3].mxu0 }
 0x28e   :  { %v533_v61 = vpop.f32.mrb[4].mxu0 }
 0x28f   :  { %v537_v62 = vmul.f32 %v533_v61, %v931_v12  ;;  %v790_v6 = vpop.f32.mrb[5].mxu0 }
 0x291   :  { %798 = vmatmul.mubr.msk.f32.vlgmr.msra.gmra.mrb[4].mxu1 %vm71_vm5, %v537_v62 }
 0x364   :  { %v674_v63 = vpop.f32.mrb[4].mxu1 }
 0x365   :  { %679 = vst [vmem:[#allocation2 + $0x1] sm:$0x1] %v674_v63  ;;  %v799_v0 = vpop.f32.mrb[5].mxu1 }
 0x366   :  { %868 = shalt.err (!%p865_p4)
}
 0x367   :  { %s869_s27 = scalar_lea.hbm %s1084_s2, 32 }
 0x368   :  { %p870_p5 = scmp.ne.s32.totalorder %s1084_s2, %s869_s27  ;;  %p873_p6 = scmp.lt.u32.totalorder %s869_s27, %s1084_s2 }
 0x36a   :  { %p875_p7 = pnand %p873_p6, %p870_p5 }
 0x36c   :  { %878 = shalt.err (!%p875_p7)
}
 0x36d   :  { %s888_s4 = smov 16   ;;  %s889_s5 = smov 1  }
 0x36e   :  { %691 = dma.vmem_to_hbm [thread:$0]  %s686_s23, 32, %s1084_s2, [#allocation3], %s888_s4, %s888_s4, %s889_s5  }
 0x36f   :  { %879 = dma.done.wait [#allocation3], 32  }
 0x370   :  { %880 = vsyncadd [#allocation3], 4294967264 }
 0x371   :  { %695 = vsyncpa [#allocation3], 1 }

</bundles_post_ra>
